<compile_context>
chip_gen: v6e
topology: v6e:2x2x1
jax: 0.10.0
libtpu: 0.0.40
codegen_flags: <defaults>
</compile_context>

<pallas_src>
import functools

import jax
import jax.numpy as jnp
from jax import lax
from jax.experimental import pallas as pl
from jax.experimental.pallas import tpu as pltpu

KSIZE = 7
PAD = (KSIZE - 1) // 2


def _spatial_attention_kernel(w_ref, x_ref, o_ref, sum_ref, max_ref, *, C, TC):
    # w_ref:   SMEM (2, KSIZE) f32   (row 0 already scaled by 1/C)
    # x_ref:   VMEM (TB, TC, L)      (input dtype)
    # o_ref:   VMEM (TB, L)          (lane-dense output slab)
    # sum_ref: VMEM (TB, L) f32      (running channel sum)
    # max_ref: VMEM (TB, L) f32      (running channel max)
    c = pl.program_id(1)
    nc = pl.num_programs(1)

    @pl.when(c == 0)
    def _init():
        sum_ref[...] = jnp.zeros_like(sum_ref)
        max_ref[...] = jnp.full_like(max_ref, -jnp.inf)

    x = x_ref[...]                                          # native dtype

    def _accumulate(xs, xm):
        # Sum accumulates in f32; max reduces in the native dtype and only the
        # (TB, L) result is cast (cheaper on bf16 inputs, no-op on f32).
        sum_ref[...] = sum_ref[...] + jnp.sum(xs.astype(jnp.float32), axis=1)
        max_ref[...] = jnp.maximum(max_ref[...],
                                   jnp.max(xm, axis=1).astype(jnp.float32))

    has_tail = (C % TC) != 0                                # static Python bool
    if has_tail:
        # Hot path: full channel tiles, no masking.
        @pl.when(c < nc - 1)
        def _hot():
            _accumulate(x, x)

        # Tail path: only the last channel tile pays the mask (padded rows are
        # garbage -> 0 for the sum, -inf for the max).
        @pl.when(c == nc - 1)
        def _tail():
            ch = c * TC + lax.broadcasted_iota(jnp.int32, (TC, x.shape[-1]), 0)
            valid = (ch < C)[None, :, :]
            xs = jnp.where(valid, x, 0.0)
            xm = jnp.where(valid, x, -jnp.inf)
            _accumulate(xs, xm)
    else:
        _accumulate(x, x)

    @pl.when(c == nc - 1)
    def _finalize():
        avg = sum_ref[...]                                  # 1/C folded into w[0, :]
        mx = max_ref[...]
        L = avg.shape[-1]
        lane = lax.broadcasted_iota(jnp.int32, avg.shape, 1)  # hoisted once

        acc = jnp.zeros_like(avg)
        # out[l] = sum_k w0[k]*avg[l+k-PAD] + w1[k]*mx[l+k-PAD]   (zero padding)
        # Python loop -> fully unrolled at trace time: every roll, mask and
        # scalar-weight splat below is emitted exactly once.
        for k in range(KSIZE):
            s = k - PAD
            if s == 0:
                a_sh, m_sh = avg, mx
            else:
                shift = (-s) % L                            # lane roll (XLU)
                a_sh = pltpu.roll(avg, shift=shift, axis=1)
                m_sh = pltpu.roll(mx, shift=shift, axis=1)
                inside = (lane >= -s) if s < 0 else (lane < L - s)
                a_sh = jnp.where(inside, a_sh, 0.0)
                m_sh = jnp.where(inside, m_sh, 0.0)
            acc = acc + w_ref[0, k] * a_sh + w_ref[1, k] * m_sh

        o_ref[...] = jax.nn.sigmoid(acc).astype(o_ref.dtype)


def _vmem_capacity_bytes():
    """Best-effort VMEM capacity query (falls back to a v7x-conservative 64 MiB)."""
    try:
        return int(pltpu.get_tpu_info().vmem_capacity_bytes)
    except Exception:
        return 64 * 1024 * 1024


def _choose_tiles(B, C, L, itemsize, vmem_cap):
    # Generation-aware per-input-block budget (review item 1):
    #   128-MiB-VMEM chips (v5e/v6e): ~16 MiB blocks; 64-MiB chips (v7x): ~8 MiB.
    if vmem_cap >= 96 * 1024 * 1024:
        budget = 16 * 1024 * 1024
    else:
        budget = 8 * 1024 * 1024

    # --- batch tile -----------------------------------------------------------
    # Output block is (TB, L) so TB must be a multiple of 8 or the full B.
    if B <= 8:
        TB = B
    elif B % 8 == 0:
        TB = 8
    elif B <= 64:
        # Full-batch tile: avoids streaming garbage overhang rows entirely.
        TB = B
    else:
        # One partial tile at the end (<= 7 garbage rows out of B > 64): the
        # overhang rows are never written back, only their HBM bytes are wasted.
        TB = 8

    # --- channel tile ---------------------------------------------------------
    row_bytes = TB * L * itemsize                 # bytes per channel slice
    max_tc = budget // max(1, row_bytes)
    if C <= 8 or max_tc >= C:
        TC = C
    elif max_tc < 8:
        # Even an 8-channel slab exceeds the budget (extreme TB*L).
        # TODO(synk): tile L as well (multiples of 128 with a +/-3 conv halo)
        # instead of over-sized blocks for extreme L; fall back to the minimum.
        TC = 8
    else:
        max_tc = (max_tc // 8) * 8
        TC = max_tc
        # Prefer a multiple of 8 that divides C so the tail mask disappears,
        # but never shrink the tile below half the budget-sized tile.
        for cand in range(max_tc, max(8, max_tc // 2) - 1, -8):
            if C % cand == 0:
                TC = cand
                break
    return TB, TC


def spatial_attention(x, weight, *, tb=None, tc=None):
    """x: (B, C, L), weight: (1, 2, KSIZE) -> (B, 1, L) in x.dtype."""
    B, C, L = x.shape
    itemsize = x.dtype.itemsize
    vmem_cap = _vmem_capacity_bytes()

    TB, TC = _choose_tiles(B, C, L, itemsize, vmem_cap)
    if tb is not None:
        TB = tb
    if tc is not None:
        TC = min(tc, C)

    out_dtype = x.dtype
    out_itemsize = jnp.dtype(out_dtype).itemsize

    # Pre-fold the 1/C of the channel mean into the first weight row so the
    # kernel only needs a raw channel sum (one fewer per-block vector scale).
    w2d = weight.reshape(2, KSIZE).astype(jnp.float32)
    w2d = w2d * jnp.array([[1.0 / C], [1.0]], dtype=jnp.float32)

    nb = pl.cdiv(B, TB)
    nc = pl.cdiv(C, TC)
    # TODO(synk): when nb == 1 on a 2-TensorCore chip (v7x) the only "parallel"
    # axis has a single block and one core idles; a channel-split partial
    # (sum, max) reduction plus a tiny combine/conv/sigmoid epilogue kernel
    # would restore ~2x occupancy for small-batch shapes.

    # VMEM budget derived from the actual block sizes (double-buffered input +
    # output blocks + resident accumulator scratch) plus headroom.
    block_bytes = (
        2 * TB * TC * L * itemsize              # input blocks (double-buffered)
        + 2 * TB * L * out_itemsize             # output block (double-buffered)
        + 2 * TB * L * 4                        # sum / max scratch
    )
    vmem_limit = int(max(16 * 1024 * 1024,
                         min(block_bytes + 4 * 1024 * 1024,
                             vmem_cap - 8 * 1024 * 1024)))

    kernel = functools.partial(_spatial_attention_kernel, C=C, TC=TC)

    out2d = pl.pallas_call(
        kernel,
        out_shape=jax.ShapeDtypeStruct((B, L), out_dtype),
        grid_spec=pltpu.PrefetchScalarGridSpec(
            num_scalar_prefetch=0,
            grid=(nb, nc),                                   # reduction axis last
            in_specs=[
                pl.BlockSpec(memory_space=pltpu.MemorySpace.SMEM),   # (2, 7) weights
                pl.BlockSpec((TB, TC, L), lambda b, c: (b, c, 0)),    # x tile
            ],
            out_specs=pl.BlockSpec((TB, L), lambda b, c: (b, 0)),     # lane-dense slab
            scratch_shapes=[
                pltpu.VMEM((TB, L), jnp.float32),    # running sum
                pltpu.VMEM((TB, L), jnp.float32),    # running max
            ],
        ),
        compiler_params=pltpu.CompilerParams(
            dimension_semantics=("parallel", "arbitrary"),
            vmem_limit_bytes=vmem_limit,
        ),
    )(w2d, x)

    return out2d[:, None, :]                                 # (B, 1, L)


def _reference(x, weight):
    avg = jnp.mean(x, axis=1, keepdims=True)
    mx = jnp.max(x, axis=1, keepdims=True)
    cat = jnp.concatenate([avg, mx], axis=1)                  # (B, 2, L)
    y = lax.conv_general_dilated(
        cat, weight,
        window_strides=(1,),
        padding=[(PAD, PAD)],
        dimension_numbers=("NCH", "OIH", "NCH"),
    )
    return jax.nn.sigmoid(y)


if __name__ == "__main__":
    key = jax.random.PRNGKey(0)
    kx, kw = jax.random.split(key)

    # Deterministic synthetic Conv1d weight, shape (out=1, in=2, k=7), no bias.
    weight = jax.random.normal(kw, (1, 2, KSIZE), dtype=jnp.float32) * 0.1

    # Case 1: small default shape from the module (B=2, C=4, L=16).
    x1 = jax.random.normal(kx, (2, 4, 16), dtype=jnp.float32)
    out1 = jax.block_until_ready(spatial_attention(x1, weight))
    assert out1.shape == (2, 1, 16)
    assert jnp.allclose(out1, _reference(x1, weight), atol=1e-5, rtol=1e-5), \
        "case 1 mismatch vs reference"

    # Case 2: multi-step channel accumulator with a partial last tile (C % TC != 0).
    x2 = jax.random.normal(jax.random.PRNGKey(1), (2, 20, 16), dtype=jnp.float32)
    out2 = jax.block_until_ready(spatial_attention(x2, weight, tc=8))
    assert jnp.allclose(out2, _reference(x2, weight), atol=1e-5, rtol=1e-5), \
        "case 2 mismatch vs reference"

    # Case 3: B not a multiple of the batch tile (partial batch tile, clipped writeback).
    x3 = jax.random.normal(jax.random.PRNGKey(2), (12, 8, 16), dtype=jnp.float32)
    out3 = jax.block_until_ready(spatial_attention(x3, weight, tb=8))
    assert out3.shape == (12, 1, 16)
    assert jnp.allclose(out3, _reference(x3, weight), atol=1e-5, rtol=1e-5), \
        "case 3 mismatch vs reference"

    print("KERNEL_OK")
</pallas_src>

<mosaic_0001>
module attributes {stable_mosaic.version = 11 : i64} {
  func.func @_spatial_attention_kernel(%arg0: i32, %arg1: i32, %arg2: memref<2x7xf32, #tpu.memory_space<smem>>, %arg3: memref<2x4x16xf32, #tpu.memory_space<vmem>>, %arg4: memref<2x16xf32, #tpu.memory_space<vmem>>, %arg5: memref<2x16xf32, #tpu.memory_space<vmem>>, %arg6: memref<2x16xf32, #tpu.memory_space<vmem>>) attributes {dimension_semantics = [#tpu.dimension_semantics<parallel>, #tpu.dimension_semantics<arbitrary>], iteration_bounds = array<i64: 1, 1>, scalar_prefetch = 0 : i64, scratch_operands = 2 : i64, tpu.core_type = #tpu.core_type<tc>, window_params = [{transform_indices = @transform_0, window_bounds = array<i64: 2, 7>}, {transform_indices = @transform_1, window_bounds = array<i64: 2, 4, 16>}, {transform_indices = @transform_2, window_bounds = array<i64: 2, 16>}]} {
    %c0_i32 = arith.constant 0 : i32
    %0 = arith.cmpi eq, %arg1, %c0_i32 : i32
    %1 = arith.extui %0 : i1 to i32
    %c0_i32_0 = arith.constant 0 : i32
    %2 = arith.cmpi ne, %1, %c0_i32_0 : i32
    scf.if %2 {
      %cst_14 = arith.constant 0.000000e+00 : f32
      %15 = vector.broadcast %cst_14 : f32 to vector<2x16xf32>
      %c0_15 = arith.constant 0 : index
      %c0_16 = arith.constant 0 : index
      %16 = vector.load %arg5[%c0_15, %c0_16] : memref<2x16xf32, #tpu.memory_space<vmem>>, vector<2x16xf32>
      tpu.vector_store %arg5[%c0_15, %c0_16], %15 {strides = array<i32>} : memref<2x16xf32, #tpu.memory_space<vmem>>, vector<2x16xf32>,
      %cst_17 = arith.constant 0xFF800000 : f32
      %17 = vector.broadcast %cst_17 : f32 to vector<2x16xf32>
      %c0_18 = arith.constant 0 : index
      %c0_19 = arith.constant 0 : index
      %18 = vector.load %arg6[%c0_18, %c0_19] : memref<2x16xf32, #tpu.memory_space<vmem>>, vector<2x16xf32>
      tpu.vector_store %arg6[%c0_18, %c0_19], %17 {strides = array<i32>} : memref<2x16xf32, #tpu.memory_space<vmem>>, vector<2x16xf32>,
    } else {
    }
    %c0 = arith.constant 0 : index
    %c0_1 = arith.constant 0 : index
    %c0_2 = arith.constant 0 : index
    %3 = vector.load %arg3[%c0, %c0_1, %c0_2] : memref<2x4x16xf32, #tpu.memory_space<vmem>>, vector<2x4x16xf32>
    %c0_3 = arith.constant 0 : index
    %c0_4 = arith.constant 0 : index
    %4 = vector.load %arg5[%c0_3, %c0_4] : memref<2x16xf32, #tpu.memory_space<vmem>>, vector<2x16xf32>
    %cst = arith.constant dense<0.000000e+00> : vector<2x16xf32>
    %5 = vector.multi_reduction <add>, %3, %cst [1] : vector<2x4x16xf32> to vector<2x16xf32>
    %6 = arith.addf %4, %5 : vector<2x16xf32>
    %c0_5 = arith.constant 0 : index
    %c0_6 = arith.constant 0 : index
    %7 = vector.load %arg5[%c0_5, %c0_6] : memref<2x16xf32, #tpu.memory_space<vmem>>, vector<2x16xf32>
    tpu.vector_store %arg5[%c0_5, %c0_6], %6 {strides = array<i32>} : memref<2x16xf32, #tpu.memory_space<vmem>>, vector<2x16xf32>,
    %c0_7 = arith.constant 0 : index
    %c0_8 = arith.constant 0 : index
    %8 = vector.load %arg6[%c0_7, %c0_8] : memref<2x16xf32, #tpu.memory_space<vmem>>, vector<2x16xf32>
    %cst_9 = arith.constant dense<0xFF800000> : vector<2x16xf32>
    %9 = vector.multi_reduction <maximumf>, %3, %cst_9 [1] : vector<2x4x16xf32> to vector<2x16xf32>
    %10 = arith.maximumf %8, %9 : vector<2x16xf32>
    %c0_10 = arith.constant 0 : index
    %c0_11 = arith.constant 0 : index
    %11 = vector.load %arg6[%c0_10, %c0_11] : memref<2x16xf32, #tpu.memory_space<vmem>>, vector<2x16xf32>
    tpu.vector_store %arg6[%c0_10, %c0_11], %10 {strides = array<i32>} : memref<2x16xf32, #tpu.memory_space<vmem>>, vector<2x16xf32>,
    %c0_i32_12 = arith.constant 0 : i32
    %12 = arith.cmpi eq, %arg1, %c0_i32_12 : i32
    %13 = arith.extui %12 : i1 to i32
    %c0_i32_13 = arith.constant 0 : i32
    %14 = arith.cmpi ne, %13, %c0_i32_13 : i32
    scf.if %14 {
      %c0_14 = arith.constant 0 : index
      %c0_15 = arith.constant 0 : index
      %15 = vector.load %arg5[%c0_14, %c0_15] : memref<2x16xf32, #tpu.memory_space<vmem>>, vector<2x16xf32>
      %c0_16 = arith.constant 0 : index
      %c0_17 = arith.constant 0 : index
      %16 = vector.load %arg6[%c0_16, %c0_17] : memref<2x16xf32, #tpu.memory_space<vmem>>, vector<2x16xf32>
      %17 = tpu.iota {dimensions = array<i32: 1>} : vector<2x16xi32>
      %cst_18 = arith.constant 0.000000e+00 : f32
      %18 = vector.broadcast %cst_18 : f32 to vector<2x16xf32>
      %c3_i32 = arith.constant 3 : i32
      %19 = tpu.dynamic_rotate %15 by %c3_i32 dim 1 : vector<2x16xf32>, i32 -> vector<2x16xf32>
      %c3_i32_19 = arith.constant 3 : i32
      %20 = tpu.dynamic_rotate %16 by %c3_i32_19 dim 1 : vector<2x16xf32>, i32 -> vector<2x16xf32>
      %c3_i32_20 = arith.constant 3 : i32
      %21 = vector.broadcast %c3_i32_20 : i32 to vector<2x16xi32>
      %22 = arith.cmpi sge, %17, %21 : vector<2x16xi32>
      %cst_21 = arith.constant 0.000000e+00 : f32
      %23 = vector.broadcast %cst_21 : f32 to vector<2x16xf32>
      %24 = arith.select %22, %19, %23 : vector<2x16xi1>, vector<2x16xf32>
      %cst_22 = arith.constant 0.000000e+00 : f32
      %25 = vector.broadcast %cst_22 : f32 to vector<2x16xf32>
      %26 = arith.select %22, %20, %25 : vector<2x16xi1>, vector<2x16xf32>
      %c0_23 = arith.constant 0 : index
      %c0_24 = arith.constant 0 : index
      %27 = memref.load %arg2[%c0_23, %c0_24] : memref<2x7xf32, #tpu.memory_space<smem>>
      %28 = vector.broadcast %27 : f32 to vector<2x16xf32>
      %29 = arith.mulf %28, %24 : vector<2x16xf32>
      %30 = arith.addf %18, %29 : vector<2x16xf32>
      %c1 = arith.constant 1 : index
      %c0_25 = arith.constant 0 : index
      %31 = memref.load %arg2[%c1, %c0_25] : memref<2x7xf32, #tpu.memory_space<smem>>
      %32 = vector.broadcast %31 : f32 to vector<2x16xf32>
      %33 = arith.mulf %32, %26 : vector<2x16xf32>
      %34 = arith.addf %30, %33 : vector<2x16xf32>
      %c2_i32 = arith.constant 2 : i32
      %35 = tpu.dynamic_rotate %15 by %c2_i32 dim 1 : vector<2x16xf32>, i32 -> vector<2x16xf32>
      %c2_i32_26 = arith.constant 2 : i32
      %36 = tpu.dynamic_rotate %16 by %c2_i32_26 dim 1 : vector<2x16xf32>, i32 -> vector<2x16xf32>
      %c2_i32_27 = arith.constant 2 : i32
      %37 = vector.broadcast %c2_i32_27 : i32 to vector<2x16xi32>
      %38 = arith.cmpi sge, %17, %37 : vector<2x16xi32>
      %cst_28 = arith.constant 0.000000e+00 : f32
      %39 = vector.broadcast %cst_28 : f32 to vector<2x16xf32>
      %40 = arith.select %38, %35, %39 : vector<2x16xi1>, vector<2x16xf32>
      %cst_29 = arith.constant 0.000000e+00 : f32
      %41 = vector.broadcast %cst_29 : f32 to vector<2x16xf32>
      %42 = arith.select %38, %36, %41 : vector<2x16xi1>, vector<2x16xf32>
      %c0_30 = arith.constant 0 : index
      %c1_31 = arith.constant 1 : index
      %43 = memref.load %arg2[%c0_30, %c1_31] : memref<2x7xf32, #tpu.memory_space<smem>>
      %44 = vector.broadcast %43 : f32 to vector<2x16xf32>
      %45 = arith.mulf %44, %40 : vector<2x16xf32>
      %46 = arith.addf %34, %45 : vector<2x16xf32>
      %c1_32 = arith.constant 1 : index
      %c1_33 = arith.constant 1 : index
      %47 = memref.load %arg2[%c1_32, %c1_33] : memref<2x7xf32, #tpu.memory_space<smem>>
      %48 = vector.broadcast %47 : f32 to vector<2x16xf32>
      %49 = arith.mulf %48, %42 : vector<2x16xf32>
      %50 = arith.addf %46, %49 : vector<2x16xf32>
      %c1_i32 = arith.constant 1 : i32
      %51 = tpu.dynamic_rotate %15 by %c1_i32 dim 1 : vector<2x16xf32>, i32 -> vector<2x16xf32>
      %c1_i32_34 = arith.constant 1 : i32
      %52 = tpu.dynamic_rotate %16 by %c1_i32_34 dim 1 : vector<2x16xf32>, i32 -> vector<2x16xf32>
      %c1_i32_35 = arith.constant 1 : i32
      %53 = vector.broadcast %c1_i32_35 : i32 to vector<2x16xi32>
      %54 = arith.cmpi sge, %17, %53 : vector<2x16xi32>
      %cst_36 = arith.constant 0.000000e+00 : f32
      %55 = vector.broadcast %cst_36 : f32 to vector<2x16xf32>
      %56 = arith.select %54, %51, %55 : vector<2x16xi1>, vector<2x16xf32>
      %cst_37 = arith.constant 0.000000e+00 : f32
      %57 = vector.broadcast %cst_37 : f32 to vector<2x16xf32>
      %58 = arith.select %54, %52, %57 : vector<2x16xi1>, vector<2x16xf32>
      %c0_38 = arith.constant 0 : index
      %c2 = arith.constant 2 : index
      %59 = memref.load %arg2[%c0_38, %c2] : memref<2x7xf32, #tpu.memory_space<smem>>
      %60 = vector.broadcast %59 : f32 to vector<2x16xf32>
      %61 = arith.mulf %60, %56 : vector<2x16xf32>
      %62 = arith.addf %50, %61 : vector<2x16xf32>
      %c1_39 = arith.constant 1 : index
      %c2_40 = arith.constant 2 : index
      %63 = memref.load %arg2[%c1_39, %c2_40] : memref<2x7xf32, #tpu.memory_space<smem>>
      %64 = vector.broadcast %63 : f32 to vector<2x16xf32>
      %65 = arith.mulf %64, %58 : vector<2x16xf32>
      %66 = arith.addf %62, %65 : vector<2x16xf32>
      %c0_41 = arith.constant 0 : index
      %c3 = arith.constant 3 : index
      %67 = memref.load %arg2[%c0_41, %c3] : memref<2x7xf32, #tpu.memory_space<smem>>
      %68 = vector.broadcast %67 : f32 to vector<2x16xf32>
      %69 = arith.mulf %68, %15 : vector<2x16xf32>
      %70 = arith.addf %66, %69 : vector<2x16xf32>
      %c1_42 = arith.constant 1 : index
      %c3_43 = arith.constant 3 : index
      %71 = memref.load %arg2[%c1_42, %c3_43] : memref<2x7xf32, #tpu.memory_space<smem>>
      %72 = vector.broadcast %71 : f32 to vector<2x16xf32>
      %73 = arith.mulf %72, %16 : vector<2x16xf32>
      %74 = arith.addf %70, %73 : vector<2x16xf32>
      %c15_i32 = arith.constant 15 : i32
      %75 = tpu.dynamic_rotate %15 by %c15_i32 dim 1 : vector<2x16xf32>, i32 -> vector<2x16xf32>
      %c15_i32_44 = arith.constant 15 : i32
      %76 = tpu.dynamic_rotate %16 by %c15_i32_44 dim 1 : vector<2x16xf32>, i32 -> vector<2x16xf32>
      %c15_i32_45 = arith.constant 15 : i32
      %77 = vector.broadcast %c15_i32_45 : i32 to vector<2x16xi32>
      %78 = arith.cmpi slt, %17, %77 : vector<2x16xi32>
      %cst_46 = arith.constant 0.000000e+00 : f32
      %79 = vector.broadcast %cst_46 : f32 to vector<2x16xf32>
      %80 = arith.select %78, %75, %79 : vector<2x16xi1>, vector<2x16xf32>
      %cst_47 = arith.constant 0.000000e+00 : f32
      %81 = vector.broadcast %cst_47 : f32 to vector<2x16xf32>
      %82 = arith.select %78, %76, %81 : vector<2x16xi1>, vector<2x16xf32>
      %c0_48 = arith.constant 0 : index
      %c4 = arith.constant 4 : index
      %83 = memref.load %arg2[%c0_48, %c4] : memref<2x7xf32, #tpu.memory_space<smem>>
      %84 = vector.broadcast %83 : f32 to vector<2x16xf32>
      %85 = arith.mulf %84, %80 : vector<2x16xf32>
      %86 = arith.addf %74, %85 : vector<2x16xf32>
      %c1_49 = arith.constant 1 : index
      %c4_50 = arith.constant 4 : index
      %87 = memref.load %arg2[%c1_49, %c4_50] : memref<2x7xf32, #tpu.memory_space<smem>>
      %88 = vector.broadcast %87 : f32 to vector<2x16xf32>
      %89 = arith.mulf %88, %82 : vector<2x16xf32>
      %90 = arith.addf %86, %89 : vector<2x16xf32>
      %c14_i32 = arith.constant 14 : i32
      %91 = tpu.dynamic_rotate %15 by %c14_i32 dim 1 : vector<2x16xf32>, i32 -> vector<2x16xf32>
      %c14_i32_51 = arith.constant 14 : i32
      %92 = tpu.dynamic_rotate %16 by %c14_i32_51 dim 1 : vector<2x16xf32>, i32 -> vector<2x16xf32>
      %c14_i32_52 = arith.constant 14 : i32
      %93 = vector.broadcast %c14_i32_52 : i32 to vector<2x16xi32>
      %94 = arith.cmpi slt, %17, %93 : vector<2x16xi32>
      %cst_53 = arith.constant 0.000000e+00 : f32
      %95 = vector.broadcast %cst_53 : f32 to vector<2x16xf32>
      %96 = arith.select %94, %91, %95 : vector<2x16xi1>, vector<2x16xf32>
      %cst_54 = arith.constant 0.000000e+00 : f32
      %97 = vector.broadcast %cst_54 : f32 to vector<2x16xf32>
      %98 = arith.select %94, %92, %97 : vector<2x16xi1>, vector<2x16xf32>
      %c0_55 = arith.constant 0 : index
      %c5 = arith.constant 5 : index
      %99 = memref.load %arg2[%c0_55, %c5] : memref<2x7xf32, #tpu.memory_space<smem>>
      %100 = vector.broadcast %99 : f32 to vector<2x16xf32>
      %101 = arith.mulf %100, %96 : vector<2x16xf32>
      %102 = arith.addf %90, %101 : vector<2x16xf32>
      %c1_56 = arith.constant 1 : index
      %c5_57 = arith.constant 5 : index
      %103 = memref.load %arg2[%c1_56, %c5_57] : memref<2x7xf32, #tpu.memory_space<smem>>
      %104 = vector.broadcast %103 : f32 to vector<2x16xf32>
      %105 = arith.mulf %104, %98 : vector<2x16xf32>
      %106 = arith.addf %102, %105 : vector<2x16xf32>
      %c13_i32 = arith.constant 13 : i32
      %107 = tpu.dynamic_rotate %15 by %c13_i32 dim 1 : vector<2x16xf32>, i32 -> vector<2x16xf32>
      %c13_i32_58 = arith.constant 13 : i32
      %108 = tpu.dynamic_rotate %16 by %c13_i32_58 dim 1 : vector<2x16xf32>, i32 -> vector<2x16xf32>
      %c13_i32_59 = arith.constant 13 : i32
      %109 = vector.broadcast %c13_i32_59 : i32 to vector<2x16xi32>
      %110 = arith.cmpi slt, %17, %109 : vector<2x16xi32>
      %cst_60 = arith.constant 0.000000e+00 : f32
      %111 = vector.broadcast %cst_60 : f32 to vector<2x16xf32>
      %112 = arith.select %110, %107, %111 : vector<2x16xi1>, vector<2x16xf32>
      %cst_61 = arith.constant 0.000000e+00 : f32
      %113 = vector.broadcast %cst_61 : f32 to vector<2x16xf32>
      %114 = arith.select %110, %108, %113 : vector<2x16xi1>, vector<2x16xf32>
      %c0_62 = arith.constant 0 : index
      %c6 = arith.constant 6 : index
      %115 = memref.load %arg2[%c0_62, %c6] : memref<2x7xf32, #tpu.memory_space<smem>>
      %116 = vector.broadcast %115 : f32 to vector<2x16xf32>
      %117 = arith.mulf %116, %112 : vector<2x16xf32>
      %118 = arith.addf %106, %117 : vector<2x16xf32>
      %c1_63 = arith.constant 1 : index
      %c6_64 = arith.constant 6 : index
      %119 = memref.load %arg2[%c1_63, %c6_64] : memref<2x7xf32, #tpu.memory_space<smem>>
      %120 = vector.broadcast %119 : f32 to vector<2x16xf32>
      %121 = arith.mulf %120, %114 : vector<2x16xf32>
      %122 = arith.addf %118, %121 : vector<2x16xf32>
      %123 = arith.negf %122 : vector<2x16xf32>
      %124 = math.exp %123 : vector<2x16xf32>
      %cst_65 = arith.constant 1.000000e+00 : f32
      %125 = vector.broadcast %cst_65 : f32 to vector<2x16xf32>
      %126 = arith.addf %125, %124 : vector<2x16xf32>
      %127 = arith.divf %125, %126 : vector<2x16xf32>
      %c0_66 = arith.constant 0 : index
      %c0_67 = arith.constant 0 : index
      %128 = vector.load %arg4[%c0_66, %c0_67] : memref<2x16xf32, #tpu.memory_space<vmem>>, vector<2x16xf32>
      tpu.vector_store %arg4[%c0_66, %c0_67], %127 {strides = array<i32>} : memref<2x16xf32, #tpu.memory_space<vmem>>, vector<2x16xf32>,
    } else {
    }
    return
  }
  func.func @transform_0(%arg0: i32, %arg1: i32) -> (i32, i32) {
    %c0_i32 = arith.constant 0 : i32
    %c0_i32_0 = arith.constant 0 : i32
    %c0_i32_1 = arith.constant 0 : i32
    return %c0_i32, %c0_i32_0 : i32, i32
  }
  func.func @transform_1(%arg0: i32, %arg1: i32) -> (i32, i32, i32) {
    %c0_i32 = arith.constant 0 : i32
    %c0_i32_0 = arith.constant 0 : i32
    return %arg0, %arg1, %c0_i32 : i32, i32, i32
  }
  func.func @transform_2(%arg0: i32, %arg1: i32) -> (i32, i32) {
    %c0_i32 = arith.constant 0 : i32
    %c0_i32_0 = arith.constant 0 : i32
    return %arg0, %c0_i32 : i32, i32
  }
}

</mosaic_0001>

<bundles_post_ra>
// kernel: tpu_custom_call.1
= control target key start
LH: loop header
LB: loop body
LE: loop exit
PB: predicated region body
PF: predicated region fallthrough
CT: control target
= control target key end

     0   :  { %7 = vsyncpa [#allocation7], 0  ;;  %s421_s0 = inlined_call_operand.hbm [shape: f32[2,7], index: 0, kind: input, shape index: {}]   ;;  %s422_s1 = inlined_call_operand.hbm [shape: f32[2,4,16], index: 1, kind: input, shape index: {}]   ;;  %s423_s2 = inlined_call_operand.hbm [shape: f32[2,16], index: 2, kind: output, shape index: {}]  }
   0x1   :  { %8 = vsyncpa [#allocation5], 0 }
   0x2   :  { %9 = vsyncpa [#allocation6], 0  ;;  %s332_s9 = smov [#allocation4]   ;;  %s333_s12 = smov [#allocation8]  }
   0x3   :  { %17 = dma.hbm_to_smem %s421_s0, 32, %s332_s9, [#allocation7]  }
   0x4   :  { %s23_s13 = sshll.u32 %s333_s12, 4  ;;  %s24_s13 = int_to_ptr.vmem [resolvable:$true] %s23_s13 }
   0x5   :  { %s294_s14 = scalar_lea.vmem %s24_s13, 128  ;;  %p299_p1 = scmp.lt.s32.totalorder %s24_s13, %s24_s13 }
   0x6   :  { %p295_p0 = scmp.ne.s32.totalorder %s24_s13, %s294_s14  ;;  %p300_p2 = scmp.lt.s32.totalorder %s294_s14, %s294_s14 }
   0x8   :  { %p301_p3 = por %p300_p2, %p299_p1 }
   0xa   :  { %p302_p4 = pnand %p301_p3, %p295_p0 }
   0xc   :  { %305 = shalt.err (!%p302_p4)
}
   0xd   :  { %s334_s15 = smov 64   ;;  %s335_s16 = smov 4  }
   0xe   :  { %29 = dma.hbm_to_vmem [thread:$0]  %s422_s1, 128, %s24_s13, [#allocation5], %s334_s15, %s334_s15, %s335_s16  }
   0xf   :  { %326 = dma.done.wait [#allocation7], 32  }
  0x10   :  { %327 = vsyncadd [#allocation7], 4294967264 }
  0x11   :  { %328 = dma.done.wait [#allocation5], 128  }
  0x12   :  { %329 = vsyncadd [#allocation5], 4294967168 }
  0x13   :  { %36 = sfence }
  0x14   :  { %vm41_vm0 = vcmask 123904   ;;  %v44_v0 = vld [vmem:[#allocation8] sm:$0xf]  ;;  %v45_v1 = vld [vmem:[#allocation8 + $0x4] sm:$0xf]  ;;  %v336_v2 = vmov 0.0   ;;  %v96_v48 = vlaneseq }
  0x15   :  { %42 = vst.msk [vmem:[#allocation2] sm:$0x3] %vm41_vm0, %v336_v2  ;;  %vm47_vm1 = vcmask 125952   ;;  %v337_v5 = vmov -inf   ;;  %vm64_vm2 = vcmask 1041409   ;;  %s338_s0 = smov 16  }
  0x16   :  { %v48_v3 = vsel %vm47_vm1, %v44_v0, 0.0  ;;  %v55_v4 = vsel %vm47_vm1, %v45_v1, 0.0  ;;  %43 = vst.msk [vmem:[#allocation3] sm:$0x3] %vm41_vm0, %v337_v5  ;;  %v71_v6 = vsel %vm47_vm1, %v44_v0, -inf  ;;  %v78_v7 = vsel %vm47_vm1, %v45_v1, -inf }
  0x17   :  { %v49_v8 = vrot.slane %v48_v3, 4  ;;  %v56_v9 = vrot.slane %v55_v4, 4  ;;  %v72_v10 = vrot.slane %v71_v6, 4  ;;  %v79_v11 = vrot.slane %v78_v7, 4  ;;  %s339_s1 = smov 115   ;;  %s340_s19 = smov 114  }
  0x18   :  { %vm98_vm3 = vcmask 1047680   ;;  %s341_s20 = smov 113   ;;  %s342_s21 = smov 127   ;;  %v381_v49 = vand.u32 127, %v96_v48 }
  0x19   :  { %v50_v12 = vadd.f32 %v49_v8, %v48_v3  ;;  %v57_v13 = vadd.f32 %v56_v9, %v55_v4  ;;  %v73_v14 = vmax.f32 %v71_v6, %v72_v10  ;;  %v80_v15 = vmax.f32 %v78_v7, %v79_v11  ;;  %s343_s22 = smov 126   ;;  %s344_s23 = smov 125  }
  0x1a   :  { %s122_s24 = sld [smem:[#allocation4]]  ;;  %vm111_vm4 = vcmp.ge.s32.totalorder %v381_v49, 3  ;;  %vm130_vm5 = vcmp.ge.s32.totalorder %v381_v49, 2  ;;  %vm147_vm6 = vcmp.ge.s32.totalorder %v381_v49, 1  ;;  %vm172_vm7 = vcmp.lt.s32.totalorder %v381_v49, 15  ;;  %s345_s10 = smov [#allocation9]  }
  0x1b   :  { %v51_v16 = vrot.slane %v50_v12, 2  ;;  %v58_v17 = vrot.slane %v57_v13, 2  ;;  %v74_v18 = vrot.slane %v73_v14, 2  ;;  %v81_v19 = vrot.slane %v80_v15, 2  ;;  %s246_s25 = sld [smem:[#allocation4 + $0x80]]  ;;  %s236_s11 = sshll.u32 %s345_s10, 4  ;;  %s237_s11 = int_to_ptr.vmem [resolvable:$true] %s236_s11 }
  0x1c   :  { %v46_v28 = vld [vmem:[#allocation2] sm:$0x3]  ;;  %s247_s26 = sld [smem:[#allocation4 + $0x1]]  ;;  %vm189_vm8 = vcmp.lt.s32.totalorder %v381_v49, 14  ;;  %vm206_vm9 = vcmp.lt.s32.totalorder %v381_v49, 13  ;;  %s306_s12 = scalar_lea.vmem %s237_s11, 32 }
  0x1d   :  { %v52_v20 = vadd.f32 %v51_v16, %v50_v12  ;;  %v59_v21 = vadd.f32 %v58_v17, %v57_v13  ;;  %v75_v22 = vmax.f32 %v73_v14, %v74_v18  ;;  %v82_v23 = vmax.f32 %v80_v15, %v81_v19  ;;  %v70_v31 = vld [vmem:[#allocation3] sm:$0x3]  ;;  %s248_s27 = sld [smem:[#allocation4 + $0x81]]  ;;  %p307_p5 = scmp.ne.s32.totalorder %s237_s11, %s306_s12 }
  0x1e   :  { %s384_s28 = sld [smem:[#allocation4 + $0x2]]  ;;  %p311_p6 = scmp.lt.s32.totalorder %s237_s11, %s237_s11 }
  0x1f   :  { %v53_v24 = vrot.slane %v52_v20, 1  ;;  %v60_v25 = vrot.slane %v59_v21, 1  ;;  %v76_v26 = vrot.slane %v75_v22, 1  ;;  %v83_v27 = vrot.slane %v82_v23, 1  ;;  %s387_s29 = sld [smem:[#allocation4 + $0x82]]  ;;  %p312_p7 = scmp.lt.s32.totalorder %s306_s12, %s306_s12 }
  0x20   :  { %v123_v51 = vstv %s122_s24  ;;  %s389_s30 = sld [smem:[#allocation4 + $0x3]] }
  0x21   :  { %v54_v29 = vadd.f32 %v53_v24, %v52_v20  ;;  %v61_v30 = vadd.f32 %v60_v25, %v59_v21  ;;  %v77_v32 = vmax.f32 %v75_v22, %v76_v26  ;;  %v84_v33 = vmax.f32 %v82_v23, %v83_v27  ;;  %s393_s3 = sld [smem:[#allocation4 + $0x83]]  ;;  %p313_p8 = por %p312_p7, %p311_p6 }
  0x22   :  { %v127_v53 = vstv %s246_s25  ;;  %v140_v57 = vstv %s247_s26  ;;  %s401_s4 = sld [smem:[#allocation4 + $0x4]] }
  0x23   :  { %v65_v34 = vsel %vm64_vm2, %v61_v30, %v54_v29  ;;  %v87_v35 = vsel %vm64_vm2, %v84_v33, %v77_v32  ;;  %v144_v61 = vstv %s248_s27  ;;  %s405_s5 = sld [smem:[#allocation4 + $0x84]]  ;;  %p314_p9 = pnand %p313_p8, %p307_p5 }
  0x24   :  { %v67_v36 = vadd.f32 %v65_v34, %v46_v28  ;;  %v89_v37 = vmax.f32 %v70_v31, %v87_v35  ;;  %v157_v3 = vstv %s384_s28  ;;  %s255_s6 = sld [smem:[#allocation4 + $0x5]] }
  0x25   :  { %v161_v7 = vstv %s387_s29  ;;  %s256_s7 = sld [smem:[#allocation4 + $0x85]] }
  0x26   :  { %69 = vst.msk [vmem:[#allocation2] sm:$0x3] %vm41_vm0, %v67_v36  ;;  %90 = vst.msk [vmem:[#allocation3] sm:$0x3] %vm41_vm0, %v89_v37  ;;  %v165_v8 = vstv %s389_s30  ;;  %s257_s8 = sld [smem:[#allocation4 + $0x6]] }
  0x27   :  { %v169_v14 = vstv %s393_s3  ;;  %s258_s9 = sld [smem:[#allocation4 + $0x86]] }
  0x28   :  { %v182_v22 = vstv %s401_s4 }
  0x29   :  { %v186_v25 = vstv %s405_s5 }
  0x2a   :  { %v199_v30 = vstv %s255_s6 }
  0x2b   :  { %v203_v35 = vstv %s256_s7 }
  0x2d   :  { %v371_v38 = vld [vmem:[#allocation2] sm:$0x3]  ;;  %v374_v39 = vld [vmem:[#allocation3] sm:$0x3] }
  0x2e   :  { %99 = vrot.lane.b32.xlu0 %v371_v38, %s338_s0  ;;  %v166_v17 = vmul.f32 %v165_v8, %v371_v38  ;;  %v170_v19 = vmul.f32 %v169_v14, %v374_v39 }
  0x32   :  { %105 = vrot.lane.b32.xlu0 %v374_v39, %s338_s0 }
  0xa0   :  { %v100_v40 = vpop.permute.xlu0 %99 }
  0xa1   :  { %v101_v41 = vsel %vm98_vm3, %v100_v40, %v371_v38  ;;  %v216_v40 = vstv %s257_s8 }
  0xa2   :  { %102 = vrot.lane.b32.xlu1 %v101_v41, %s338_s0 }
  0xa4   :  { %v106_v42 = vpop.permute.xlu0 %105 }
  0xa5   :  { %v107_v43 = vsel %vm98_vm3, %v106_v42, %v374_v39 }
  0xa6   :  { %108 = vrot.lane.b32.xlu1 %v107_v43, %s338_s0 }
 0x114   :  { %v103_v44 = vpop.permute.xlu1 %102 }
 0x115   :  { %v104_v45 = vsel %vm98_vm3, %v103_v44, %v371_v38  ;;  %v220_v44 = vstv %s258_s9 }
 0x116   :  { %113 = vrot.lane.b32.xlu0 %v104_v45, %s339_s1 }
 0x118   :  { %v109_v46 = vpop.permute.xlu1 %108 }
 0x119   :  { %v110_v47 = vsel %vm98_vm3, %v109_v46, %v374_v39 }
 0x11a   :  { %131 = vrot.lane.b32.xlu0 %v104_v45, %s340_s19  ;;  %118 = vrot.lane.b32.xlu1 %v110_v47, %s339_s1 }
 0x11e   :  { %148 = vrot.lane.b32.xlu0 %v104_v45, %s341_s20  ;;  %135 = vrot.lane.b32.xlu1 %v110_v47, %s340_s19 }
 0x122   :  { %173 = vrot.lane.b32.xlu0 %v104_v45, %s342_s21  ;;  %152 = vrot.lane.b32.xlu1 %v110_v47, %s341_s20 }
 0x126   :  { %190 = vrot.lane.b32.xlu0 %v104_v45, %s343_s22  ;;  %177 = vrot.lane.b32.xlu1 %v110_v47, %s342_s21 }
 0x12a   :  { %207 = vrot.lane.b32.xlu0 %v104_v45, %s344_s23  ;;  %194 = vrot.lane.b32.xlu1 %v110_v47, %s343_s22 }
 0x12e   :  { %211 = vrot.lane.b32.xlu1 %v110_v47, %s344_s23 }
 0x188   :  { %v114_v50 = vpop.permute.xlu0 %113 }
 0x189   :  { %v116_v52 = vsel %vm111_vm4, %v114_v50, 0.0 }
 0x18a   :  { %v124_v59 = vmul.f32 %v123_v51, %v116_v52 }
 0x18c   :  { %v119_v54 = vpop.permute.xlu1 %118  ;;  %v132_v55 = vpop.permute.xlu0 %131 }
 0x18d   :  { %v121_v56 = vsel %vm111_vm4, %v119_v54, 0.0  ;;  %v134_v58 = vsel %vm130_vm5, %v132_v55, 0.0 }
 0x18e   :  { %v128_v60 = vmul.f32 %v127_v53, %v121_v56  ;;  %v141_v63 = vmul.f32 %v140_v57, %v134_v58 }
 0x190   :  { %v129_v62 = vadd.f32 %v128_v60, %v124_v59  ;;  %v136_v0 = vpop.permute.xlu1 %135  ;;  %v149_v1 = vpop.permute.xlu0 %148 }
 0x191   :  { %v138_v2 = vsel %vm130_vm5, %v136_v0, 0.0  ;;  %v151_v4 = vsel %vm147_vm6, %v149_v1, 0.0 }
 0x192   :  { %v142_v5 = vadd.f32 %v141_v63, %v129_v62  ;;  %v145_v6 = vmul.f32 %v144_v61, %v138_v2  ;;  %v158_v10 = vmul.f32 %v157_v3, %v151_v4 }
 0x194   :  { %v146_v9 = vadd.f32 %v145_v6, %v142_v5  ;;  %v153_v11 = vpop.permute.xlu1 %152  ;;  %v174_v12 = vpop.permute.xlu0 %173 }
 0x195   :  { %v155_v13 = vsel %vm147_vm6, %v153_v11, 0.0  ;;  %v176_v23 = vsel %vm172_vm7, %v174_v12, 0.0 }
 0x196   :  { %v159_v15 = vadd.f32 %v158_v10, %v146_v9  ;;  %v162_v16 = vmul.f32 %v161_v7, %v155_v13  ;;  %v183_v28 = vmul.f32 %v182_v22, %v176_v23 }
 0x198   :  { %v163_v18 = vadd.f32 %v162_v16, %v159_v15  ;;  %v178_v20 = vpop.permute.xlu1 %177  ;;  %v191_v21 = vpop.permute.xlu0 %190 }
 0x199   :  { %v180_v26 = vsel %vm172_vm7, %v178_v20, 0.0  ;;  %v193_v31 = vsel %vm189_vm8, %v191_v21, 0.0 }
 0x19a   :  { %v167_v24 = vadd.f32 %v166_v17, %v163_v18  ;;  %v187_v33 = vmul.f32 %v186_v25, %v180_v26  ;;  %v200_v38 = vmul.f32 %v199_v30, %v193_v31 }
 0x19c   :  { %v171_v27 = vadd.f32 %v170_v19, %v167_v24  ;;  %v195_v29 = vpop.permute.xlu1 %194  ;;  %v208_v34 = vpop.permute.xlu0 %207 }
 0x19d   :  { %v197_v36 = vsel %vm189_vm8, %v195_v29, 0.0  ;;  %v210_v41 = vsel %vm206_vm9, %v208_v34, 0.0 }
 0x19e   :  { %v184_v32 = vadd.f32 %v183_v28, %v171_v27  ;;  %v204_v43 = vmul.f32 %v203_v35, %v197_v36  ;;  %v217_v47 = vmul.f32 %v216_v40, %v210_v41 }
 0x1a0   :  { %v188_v37 = vadd.f32 %v187_v33, %v184_v32  ;;  %v212_v39 = vpop.permute.xlu1 %211 }
 0x1a1   :  { %v214_v45 = vsel %vm206_vm9, %v212_v39, 0.0 }
 0x1a2   :  { %v201_v42 = vadd.f32 %v200_v38, %v188_v37  ;;  %v221_v50 = vmul.f32 %v220_v44, %v214_v45 }
 0x1a4   :  { %v205_v46 = vadd.f32 %v204_v43, %v201_v42 }
 0x1a6   :  { %v218_v48 = vadd.f32 %v217_v47, %v205_v46 }
 0x1a8   :  { %v222_v51 = vadd.f32 %v221_v50, %v218_v48 }
 0x1aa   :  { %v259_v52 = vmul.f32 -1.442695, %v222_v51 }
 0x1ac   :  { %274 = vpow2.f32 %v259_v52 }
 0x1b9   :  { %v275_v49 = vpop.eup %274 }
 0x1ba   :  { %v226_v53 = vadd.f32 1.0, %v275_v49 }
 0x1bc   :  { %276 = vrcp.f32 %v226_v53 }
 0x1c9   :  { %v277_v54 = vpop.eup %276 }
 0x1ca   :  { %229 = vst.msk [vmem:[#allocation9] sm:$0x3] %vm41_vm0, %v277_v54 }
 0x1cb   :  { %317 = shalt.err (!%p314_p9)
}
 0x1cc   :  { %239 = dma.vmem_to_hbm [thread:$0]  %s237_s11, 32, %s423_s2, [#allocation6]  }
 0x1cd   :  { %330 = dma.done.wait [#allocation6], 32  }
 0x1ce   :  { %331 = vsyncadd [#allocation6], 4294967264 }
 0x1cf   :  { %243 = vsyncpa [#allocation5], 1 }
 0x1d0   :  { %244 = vsyncpa [#allocation6], 1 }
 0x1d1   :  { %245 = vsyncpa [#allocation7], 1 }

</bundles_post_ra>
